<compile_context>
chip_gen: v5e
topology: v5e:2x2
jax: 0.10.0
libtpu: 0.0.40
codegen_flags: <defaults>
</compile_context>

<pallas_src>
import functools

import jax
import jax.numpy as jnp
from jax.experimental import pallas as pl
from jax.experimental.pallas import tpu as pltpu

LANE = 128          # lane width (pad granularity for channel dims and adjacency source dims)
SUBLANE_F32 = 8     # f32 sublane tile (target-row pad granularity for the f32 output path)


def _round_up(v, m):
    return ((v + m - 1) // m) * m


def _mm_flops(m, k, n):
    return 2 * m * k * n


def _layer_plan(n_tgt, n_src, c_in, c_out):
    """Static (trace-time) association choice for one SAGE layer at the padded shapes.

    Returns (use_aggregate_first, total matmul flops including the root term).  Used by both the
    kernel body and the wrapper's CostEstimate so the two stay consistent (review #10).
    """
    agg_first = _mm_flops(n_tgt, n_src, c_in) + _mm_flops(n_tgt, c_in, c_out)
    xform_first = _mm_flops(n_src, c_in, c_out) + _mm_flops(n_tgt, n_src, c_out)
    use_agg_first = agg_first <= xform_first
    flops = min(agg_first, xform_first) + _mm_flops(n_tgt, c_in, c_out)  # + lin_r (root) matmul
    return use_agg_first, flops


def _sage_layer(a, x_src, x_tgt, wl, b, wr):
    """One SAGEConv. Mean aggregation as a dense f32 A_norm matmul (exact 1/deg), weight matmuls
    with bf16 operands and f32 MXU accumulation."""
    f32 = jnp.float32
    n_tgt, n_src = a.shape
    c_in, c_out = wl.shape
    use_agg_first, _ = _layer_plan(n_tgt, n_src, c_in, c_out)
    if use_agg_first:
        agg = jnp.dot(a, x_src, preferred_element_type=f32)            # mean over neighbours (f32)
        h = jnp.dot(agg.astype(jnp.bfloat16), wl, preferred_element_type=f32)
    else:
        xw = jnp.dot(x_src, wl, preferred_element_type=f32)            # transform-then-aggregate
        h = jnp.dot(a, xw.astype(jnp.bfloat16), preferred_element_type=f32)
    h = h + b                                                          # lin_l bias (f32)
    h = h + jnp.dot(x_tgt, wr, preferred_element_type=f32)             # root (lin_r) term
    return h


def sage2_fused_kernel(a1_ref, a2_ref, x_ref, wl1_ref, wr1_ref, b1_ref,
                       wl2_ref, wr2_ref, b2_ref, o_ref, *, c_out_valid):
    """Fused 2-layer GraphSAGE forward: conv1 -> ReLU -> conv2 -> log_softmax.

    Layer-1 activations never leave VMEM.  x_target of each layer is a tile-aligned row slice of
    that layer's (already resident) source features.  Padded target rows of h1 hold garbage, but
    a2's padded columns are zero so they never reach the output; padded output channel lanes of
    h2 are exactly zero because every padded weight/bias column is zero.
    """
    x = x_ref[...]                                  # (n0_pad, ci_pad) bf16, lane-dense
    n1_pad = a1_ref.shape[0]
    n2_pad = a2_ref.shape[0]

    # ---- layer 1 ----
    h1 = _sage_layer(a1_ref[...], x, x[:n1_pad, :],
                     wl1_ref[...], b1_ref[...], wr1_ref[...])
    h1 = jnp.maximum(h1, 0.0)                       # ReLU
    # TODO(synk): F.dropout(p=0.5) is identity in eval mode; training-mode dropout omitted.

    # ---- layer 2 ----
    h1_src = h1.astype(jnp.bfloat16)                # stays in VMEM
    h1_tgt = h1[:n2_pad, :].astype(jnp.bfloat16)    # slice f32 (8-row tile-aligned) THEN cast
    h2 = _sage_layer(a2_ref[...], h1_src, h1_tgt,
                     wl2_ref[...], b2_ref[...], wr2_ref[...])

    # ---- log_softmax over the valid (unpadded) output channels ----
    col = jax.lax.broadcasted_iota(jnp.int32, h2.shape, 1)
    valid = col < c_out_valid
    m = jnp.max(jnp.where(valid, h2, -jnp.inf), axis=-1, keepdims=True)
    e = jnp.where(valid, jnp.exp(h2 - m), 0.0)
    lse = jnp.log(jnp.sum(e, axis=-1, keepdims=True))
    # Padded lanes hold garbage ((0 - m) - lse); the caller always slices them off.
    o_ref[...] = ((h2 - m) - lse).astype(o_ref.dtype)                  # single lane-dense store


def pack_sage_params(params, lane_multiple=LANE):
    """One-time parameter prep: transpose to (C_in, C_out), zero-pad channel dims to the lane
    width, cast matmul weights to bf16 (bias stays f32)."""
    packed = []
    for w_l, b_l, w_r in params:
        c_out, c_in = w_l.shape
        ci_p, co_p = _round_up(c_in, lane_multiple), _round_up(c_out, lane_multiple)
        wl_t = (jnp.zeros((ci_p, co_p), jnp.float32)
                .at[:c_in, :c_out].set(w_l.T).astype(jnp.bfloat16))
        wr_t = (jnp.zeros((ci_p, co_p), jnp.float32)
                .at[:c_in, :c_out].set(w_r.T).astype(jnp.bfloat16))
        b2d = jnp.zeros((1, co_p), jnp.float32).at[0, :c_out].set(b_l)
        packed.append((wl_t, wr_t, b2d, c_in, c_out))
    return packed


def pack_sage_inputs(x, adjs, lane_multiple=LANE):
    """One-time graph/feature prep (done once, like the weights — not per forward):
      * a1, a2 stay f32 (exact 1/deg) and are zero-padded so their source (lane) dims are
        multiples of 128 and their target (sublane) dims are tile multiples,
      * x is zero-padded to match a1's source dim and the lane-padded input channels, cast bf16.
    Zero-padded rows/cols contribute nothing, so the aggregation is exact."""
    (a1, n1), (a2, n2) = adjs
    n0 = a1.shape[1]
    c_in = x.shape[1]
    n0_pad = _round_up(n0, lane_multiple)        # a1 lane dim == x row dim
    n1_pad = _round_up(n1, lane_multiple)        # a2 lane dim == a1/h1 row dim (also sublane-ok)
    n2_pad = _round_up(n2, SUBLANE_F32)          # output rows (f32 path)
    ci_p = _round_up(c_in, lane_multiple)

    a1_p = jnp.zeros((n1_pad, n0_pad), jnp.float32).at[:n1, :n0].set(a1)
    a2_p = jnp.zeros((n2_pad, n1_pad), jnp.float32).at[:n2, :n1].set(a2)
    x_p = (jnp.zeros((n0_pad, ci_p), jnp.float32)
           .at[:n0, :c_in].set(x).astype(jnp.bfloat16))
    return a1_p, a2_p, x_p, n2


def sage_forward_fused(packed_inputs, packed_params):
    """Single fused pallas_call covering both SAGEConv layers + log_softmax.
    All operands are pre-padded / pre-cast; no per-forward wrapper-side layout ops."""
    a1_p, a2_p, x_p, n2_valid = packed_inputs
    (wl1, wr1, b1, _c_in1, _c_hid), (wl2, wr2, b2, _c_in2, c_out) = packed_params
    n1_pad, n0_pad = a1_p.shape
    n2_pad = a2_p.shape[0]
    ci_p, hid_p = wl1.shape
    co_p = wl2.shape[1]

    operands = (a1_p, a2_p, x_p, wl1, wr1, b1, wl2, wr2, b2)
    kernel = functools.partial(sage2_fused_kernel, c_out_valid=c_out)

    # Cost estimate consistent with the association the kernel actually picks (review #10).
    _, flops_l1 = _layer_plan(n1_pad, n0_pad, ci_p, hid_p)
    _, flops_l2 = _layer_plan(n2_pad, n1_pad, hid_p, co_p)
    flops = flops_l1 + flops_l2
    bytes_accessed = (sum(int(o.size) * o.dtype.itemsize for o in operands)
                      + n2_pad * co_p * 4)
    transcendentals = n2_pad * co_p + n2_pad          # exp per element + log per row

    # Derived VMEM budget: tiny at demo shapes; stays well under v7x's 32 MiB scoped default /
    # 64 MiB physical and the v5e/v6e 128 MiB physical.  At scale re-derive per generation and
    # raise toward ~64-100 MiB on v6e for 512-1024-row target tiles (review #6/#7/#8).
    vmem_limit = int(min(64 * 2**20, max(8 * 2**20, 6 * bytes_accessed)))

    out_p = pl.pallas_call(
        kernel,
        grid=(1,),
        out_shape=jax.ShapeDtypeStruct((n2_pad, co_p), jnp.float32),
        in_specs=[pl.BlockSpec(o.shape, lambda i: (0, 0)) for o in operands],
        out_specs=pl.BlockSpec((n2_pad, co_p), lambda i: (0, 0)),
        compiler_params=pltpu.CompilerParams(
            dimension_semantics=("parallel",),
            vmem_limit_bytes=vmem_limit,
        ),
        cost_estimate=pl.CostEstimate(
            flops=int(flops),
            transcendentals=int(transcendentals),
            bytes_accessed=int(bytes_accessed),
        ),
    )(*operands)
    return out_p[:n2_valid, :c_out]                   # drop padded rows/lanes


def build_adj(key, n_src, n_tgt, fanout):
    """Deterministic random bipartite edges -> dense row-normalized adjacency
    (equivalent to PyG scatter-mean over edge_index, duplicates included)."""
    src = jax.random.randint(key, (n_tgt, fanout), 0, n_src)
    dst = jnp.repeat(jnp.arange(n_tgt), fanout)
    a = jnp.zeros((n_tgt, n_src), jnp.float32).at[dst, src.reshape(-1)].add(1.0)
    deg = jnp.sum(a, axis=1, keepdims=True)
    return jnp.where(deg > 0, a / jnp.maximum(deg, 1.0), 0.0)


def ref_forward(x, adjs, params, num_layers=2):
    """Pure-JAX f32 reference mirroring SAGE.forward (eval mode)."""
    for i, (a, n_tgt) in enumerate(adjs):
        xt = x[:n_tgt]
        w_l, b_l, w_r = params[i]
        h = (a @ x) @ w_l.T + b_l + xt @ w_r.T
        if i != num_layers - 1:
            h = jnp.maximum(h, 0.0)
        x = h
    return jax.nn.log_softmax(x, axis=-1)


if __name__ == "__main__":
    # Small synthetic neighbor-sampled bipartite graphs:
    #   layer 1: 32 source nodes -> 16 target nodes
    #   layer 2: 16 source nodes ->  8 target nodes
    IN_CH, HID_CH, OUT_CH = 16, 32, 8
    N0, N1, N2 = 32, 16, 8
    FANOUT = 4

    key = jax.random.PRNGKey(0)
    kx, ka1, ka2, kw1, kb1, kr1, kw2, kb2, kr2 = jax.random.split(key, 9)

    x = jax.random.normal(kx, (N0, IN_CH), jnp.float32)

    adjs = [
        (build_adj(ka1, N0, N1, FANOUT), N1),
        (build_adj(ka2, N1, N2, FANOUT), N2),
    ]

    # SAGEConv parameters (deterministic init):
    #   lin_l: weight (out, in) + bias (out,)   — applied to aggregated neighbors
    #   lin_r: weight (out, in), no bias        — applied to target (root) features
    params = [
        (
            0.1 * jax.random.normal(kw1, (HID_CH, IN_CH), jnp.float32),
            0.1 * jax.random.normal(kb1, (HID_CH,), jnp.float32),
            0.1 * jax.random.normal(kr1, (HID_CH, IN_CH), jnp.float32),
        ),
        (
            0.1 * jax.random.normal(kw2, (OUT_CH, HID_CH), jnp.float32),
            0.1 * jax.random.normal(kb2, (OUT_CH,), jnp.float32),
            0.1 * jax.random.normal(kr2, (OUT_CH, HID_CH), jnp.float32),
        ),
    ]

    packed_params = pack_sage_params(params)      # one-time transpose / pad / bf16 cast
    packed_inputs = pack_sage_inputs(x, adjs)     # one-time feature/adjacency pad + cast

    out = sage_forward_fused(packed_inputs, packed_params)
    out = jax.block_until_ready(out)

    ref = ref_forward(x, adjs, params)
    assert out.shape == (N2, OUT_CH), out.shape
    # bf16 feature/weight operands (f32 accumulation) => looser tolerance vs. pure-f32 reference.
    assert jnp.allclose(out, ref, atol=3e-2, rtol=3e-2), "mismatch vs. pure-JAX reference"

    print("KERNEL_OK")
</pallas_src>

<mosaic_0001>
module attributes {stable_mosaic.version = 11 : i64} {
  func.func @sage2_fused_kernel(%arg0: i32, %arg1: memref<128x128xf32, #tpu.memory_space<vmem>>, %arg2: memref<8x128xf32, #tpu.memory_space<vmem>>, %arg3: memref<128x128xbf16, #tpu.memory_space<vmem>>, %arg4: memref<128x128xbf16, #tpu.memory_space<vmem>>, %arg5: memref<128x128xbf16, #tpu.memory_space<vmem>>, %arg6: memref<1x128xf32, #tpu.memory_space<vmem>>, %arg7: memref<128x128xbf16, #tpu.memory_space<vmem>>, %arg8: memref<128x128xbf16, #tpu.memory_space<vmem>>, %arg9: memref<1x128xf32, #tpu.memory_space<vmem>>, %arg10: memref<8x128xf32, #tpu.memory_space<vmem>>) attributes {dimension_semantics = [#tpu.dimension_semantics<parallel>], iteration_bounds = array<i64: 1>, scalar_prefetch = 0 : i64, scratch_operands = 0 : i64, tpu.core_type = #tpu.core_type<tc>, window_params = [{pipeline_mode = #tpu.pipeline_mode<synchronous>, transform_indices = @transform_0, window_bounds = array<i64: 128, 128>}, {pipeline_mode = #tpu.pipeline_mode<synchronous>, transform_indices = @transform_1, window_bounds = array<i64: 8, 128>}, {pipeline_mode = #tpu.pipeline_mode<synchronous>, transform_indices = @transform_2, window_bounds = array<i64: 128, 128>}, {pipeline_mode = #tpu.pipeline_mode<synchronous>, transform_indices = @transform_3, window_bounds = array<i64: 128, 128>}, {pipeline_mode = #tpu.pipeline_mode<synchronous>, transform_indices = @transform_4, window_bounds = array<i64: 128, 128>}, {pipeline_mode = #tpu.pipeline_mode<synchronous>, transform_indices = @transform_5, window_bounds = array<i64: 1, 128>}, {pipeline_mode = #tpu.pipeline_mode<synchronous>, transform_indices = @transform_6, window_bounds = array<i64: 128, 128>}, {pipeline_mode = #tpu.pipeline_mode<synchronous>, transform_indices = @transform_7, window_bounds = array<i64: 128, 128>}, {pipeline_mode = #tpu.pipeline_mode<synchronous>, transform_indices = @transform_8, window_bounds = array<i64: 1, 128>}, {pipeline_mode = #tpu.pipeline_mode<synchronous>, transform_indices = @transform_9, window_bounds = array<i64: 8, 128>}]} {
    %c0 = arith.constant 0 : index
    %c0_0 = arith.constant 0 : index
    %0 = vector.load %arg3[%c0, %c0_0] : memref<128x128xbf16, #tpu.memory_space<vmem>>, vector<128x128xbf16>
    %c0_1 = arith.constant 0 : index
    %c0_2 = arith.constant 0 : index
    %1 = vector.load %arg1[%c0_1, %c0_2] : memref<128x128xf32, #tpu.memory_space<vmem>>, vector<128x128xf32>
    %c0_3 = arith.constant 0 : index
    %c0_4 = arith.constant 0 : index
    %2 = vector.load %arg4[%c0_3, %c0_4] : memref<128x128xbf16, #tpu.memory_space<vmem>>, vector<128x128xbf16>
    %c0_5 = arith.constant 0 : index
    %c0_6 = arith.constant 0 : index
    %3 = vector.load %arg6[%c0_5, %c0_6] : memref<1x128xf32, #tpu.memory_space<vmem>>, vector<1x128xf32>
    %c0_7 = arith.constant 0 : index
    %c0_8 = arith.constant 0 : index
    %4 = vector.load %arg5[%c0_7, %c0_8] : memref<128x128xbf16, #tpu.memory_space<vmem>>, vector<128x128xbf16>
    %cst = arith.constant dense<0.000000e+00> : vector<128x128xf32>
    %5 = tpu.matmul %1, %0, %cst {dimension_numbers = #tpu.dot_dimension_numbers<[1], [0], [0], [1], [0, 0, 1, 1], [], []>} : vector<128x128xf32>, vector<128x128xbf16>, vector<128x128xf32> -> vector<128x128xf32>
    %6 = arith.truncf %5 : vector<128x128xf32> to vector<128x128xbf16>
    %cst_9 = arith.constant dense<0.000000e+00> : vector<128x128xf32>
    %7 = tpu.matmul %6, %2, %cst_9 {dimension_numbers = #tpu.dot_dimension_numbers<[1], [0], [0], [1], [0, 0, 1, 1], [], []>} : vector<128x128xbf16>, vector<128x128xbf16>, vector<128x128xf32> -> vector<128x128xf32>
    %8 = vector.broadcast %3 : vector<1x128xf32> to vector<128x128xf32>
    %9 = arith.addf %7, %8 : vector<128x128xf32>
    %cst_10 = arith.constant dense<0.000000e+00> : vector<128x128xf32>
    %10 = tpu.matmul %0, %4, %cst_10 {dimension_numbers = #tpu.dot_dimension_numbers<[1], [0], [0], [1], [0, 0, 1, 1], [], []>} : vector<128x128xbf16>, vector<128x128xbf16>, vector<128x128xf32> -> vector<128x128xf32>
    %11 = arith.addf %9, %10 : vector<128x128xf32>
    %cst_11 = arith.constant 0.000000e+00 : f32
    %12 = vector.broadcast %cst_11 : f32 to vector<128x128xf32>
    %13 = arith.maximumf %11, %12 : vector<128x128xf32>
    %14 = arith.truncf %13 : vector<128x128xf32> to vector<128x128xbf16>
    %15 = vector.extract_strided_slice %13 {offsets = [0, 0], sizes = [8, 128], strides = [1, 1]} : vector<128x128xf32> to vector<8x128xf32>
    %16 = arith.truncf %15 : vector<8x128xf32> to vector<8x128xbf16>
    %c0_12 = arith.constant 0 : index
    %c0_13 = arith.constant 0 : index
    %17 = vector.load %arg2[%c0_12, %c0_13] : memref<8x128xf32, #tpu.memory_space<vmem>>, vector<8x128xf32>
    %c0_14 = arith.constant 0 : index
    %c0_15 = arith.constant 0 : index
    %18 = vector.load %arg7[%c0_14, %c0_15] : memref<128x128xbf16, #tpu.memory_space<vmem>>, vector<128x128xbf16>
    %c0_16 = arith.constant 0 : index
    %c0_17 = arith.constant 0 : index
    %19 = vector.load %arg9[%c0_16, %c0_17] : memref<1x128xf32, #tpu.memory_space<vmem>>, vector<1x128xf32>
    %c0_18 = arith.constant 0 : index
    %c0_19 = arith.constant 0 : index
    %20 = vector.load %arg8[%c0_18, %c0_19] : memref<128x128xbf16, #tpu.memory_space<vmem>>, vector<128x128xbf16>
    %cst_20 = arith.constant dense<0.000000e+00> : vector<8x128xf32>
    %21 = tpu.matmul %17, %14, %cst_20 {dimension_numbers = #tpu.dot_dimension_numbers<[1], [0], [0], [1], [0, 0, 1, 1], [], []>} : vector<8x128xf32>, vector<128x128xbf16>, vector<8x128xf32> -> vector<8x128xf32>
    %22 = arith.truncf %21 : vector<8x128xf32> to vector<8x128xbf16>
    %cst_21 = arith.constant dense<0.000000e+00> : vector<8x128xf32>
    %23 = tpu.matmul %22, %18, %cst_21 {dimension_numbers = #tpu.dot_dimension_numbers<[1], [0], [0], [1], [0, 0, 1, 1], [], []>} : vector<8x128xbf16>, vector<128x128xbf16>, vector<8x128xf32> -> vector<8x128xf32>
    %24 = vector.broadcast %19 : vector<1x128xf32> to vector<8x128xf32>
    %25 = arith.addf %23, %24 : vector<8x128xf32>
    %cst_22 = arith.constant dense<0.000000e+00> : vector<8x128xf32>
    %26 = tpu.matmul %16, %20, %cst_22 {dimension_numbers = #tpu.dot_dimension_numbers<[1], [0], [0], [1], [0, 0, 1, 1], [], []>} : vector<8x128xbf16>, vector<128x128xbf16>, vector<8x128xf32> -> vector<8x128xf32>
    %27 = arith.addf %25, %26 : vector<8x128xf32>
    %28 = tpu.iota {dimensions = array<i32: 1>} : vector<8x128xi32>
    %c8_i32 = arith.constant 8 : i32
    %29 = vector.broadcast %c8_i32 : i32 to vector<8x128xi32>
    %30 = arith.cmpi slt, %28, %29 : vector<8x128xi32>
    %cst_23 = arith.constant 0xFF800000 : f32
    %31 = vector.broadcast %cst_23 : f32 to vector<8x128xf32>
    %32 = arith.select %30, %27, %31 : vector<8x128xi1>, vector<8x128xf32>
    %cst_24 = arith.constant dense<0xFF800000> : vector<8xf32>
    %33 = vector.multi_reduction <maximumf>, %32, %cst_24 [1] : vector<8x128xf32> to vector<8xf32>
    %34 = vector.shape_cast %33 : vector<8xf32> to vector<8x1xf32>
    %35 = vector.broadcast %34 : vector<8x1xf32> to vector<8x128xf32>
    %36 = arith.subf %27, %35 : vector<8x128xf32>
    %37 = math.exp %36 : vector<8x128xf32>
    %cst_25 = arith.constant 0.000000e+00 : f32
    %38 = vector.broadcast %cst_25 : f32 to vector<8x128xf32>
    %39 = arith.select %30, %37, %38 : vector<8x128xi1>, vector<8x128xf32>
    %cst_26 = arith.constant dense<0.000000e+00> : vector<8xf32>
    %40 = vector.multi_reduction <add>, %39, %cst_26 [1] : vector<8x128xf32> to vector<8xf32>
    %41 = vector.shape_cast %40 : vector<8xf32> to vector<8x1xf32>
    %42 = math.log %41 : vector<8x1xf32>
    %43 = vector.broadcast %34 : vector<8x1xf32> to vector<8x128xf32>
    %44 = arith.subf %27, %43 : vector<8x128xf32>
    %45 = vector.broadcast %42 : vector<8x1xf32> to vector<8x128xf32>
    %46 = arith.subf %44, %45 : vector<8x128xf32>
    %c0_27 = arith.constant 0 : index
    %c0_28 = arith.constant 0 : index
    %47 = vector.load %arg10[%c0_27, %c0_28] : memref<8x128xf32, #tpu.memory_space<vmem>>, vector<8x128xf32>
    tpu.vector_store %arg10[%c0_27, %c0_28], %46 {strides = array<i32>} : memref<8x128xf32, #tpu.memory_space<vmem>>, vector<8x128xf32>,
    return
  }
  func.func @transform_0(%arg0: i32) -> (i32, i32) {
    %c0_i32 = arith.constant 0 : i32
    %c0_i32_0 = arith.constant 0 : i32
    %c0_i32_1 = arith.constant 0 : i32
    return %c0_i32, %c0_i32_0 : i32, i32
  }
  func.func @transform_1(%arg0: i32) -> (i32, i32) {
    %c0_i32 = arith.constant 0 : i32
    %c0_i32_0 = arith.constant 0 : i32
    %c0_i32_1 = arith.constant 0 : i32
    return %c0_i32, %c0_i32_0 : i32, i32
  }
  func.func @transform_2(%arg0: i32) -> (i32, i32) {
    %c0_i32 = arith.constant 0 : i32
    %c0_i32_0 = arith.constant 0 : i32
    %c0_i32_1 = arith.constant 0 : i32
    return %c0_i32, %c0_i32_0 : i32, i32
  }
  func.func @transform_3(%arg0: i32) -> (i32, i32) {
    %c0_i32 = arith.constant 0 : i32
    %c0_i32_0 = arith.constant 0 : i32
    %c0_i32_1 = arith.constant 0 : i32
    return %c0_i32, %c0_i32_0 : i32, i32
  }
  func.func @transform_4(%arg0: i32) -> (i32, i32) {
    %c0_i32 = arith.constant 0 : i32
    %c0_i32_0 = arith.constant 0 : i32
    %c0_i32_1 = arith.constant 0 : i32
    return %c0_i32, %c0_i32_0 : i32, i32
  }
  func.func @transform_5(%arg0: i32) -> (i32, i32) {
    %c0_i32 = arith.constant 0 : i32
    %c0_i32_0 = arith.constant 0 : i32
    %c0_i32_1 = arith.constant 0 : i32
    return %c0_i32, %c0_i32_0 : i32, i32
  }
  func.func @transform_6(%arg0: i32) -> (i32, i32) {
    %c0_i32 = arith.constant 0 : i32
    %c0_i32_0 = arith.constant 0 : i32
    %c0_i32_1 = arith.constant 0 : i32
    return %c0_i32, %c0_i32_0 : i32, i32
  }
  func.func @transform_7(%arg0: i32) -> (i32, i32) {
    %c0_i32 = arith.constant 0 : i32
    %c0_i32_0 = arith.constant 0 : i32
    %c0_i32_1 = arith.constant 0 : i32
    return %c0_i32, %c0_i32_0 : i32, i32
  }
  func.func @transform_8(%arg0: i32) -> (i32, i32) {
    %c0_i32 = arith.constant 0 : i32
    %c0_i32_0 = arith.constant 0 : i32
    %c0_i32_1 = arith.constant 0 : i32
    return %c0_i32, %c0_i32_0 : i32, i32
  }
  func.func @transform_9(%arg0: i32) -> (i32, i32) {
    %c0_i32 = arith.constant 0 : i32
    %c0_i32_0 = arith.constant 0 : i32
    %c0_i32_1 = arith.constant 0 : i32
    return %c0_i32, %c0_i32_0 : i32, i32
  }
}

</mosaic_0001>

<bundles_post_ra>
// kernel: tpu_custom_call.1
= control target key start
LH: loop header
LB: loop body
LE: loop exit
PB: predicated region body
PF: predicated region fallthrough
CT: control target
= control target key end

     0   :  { %14 = vsyncpa [#allocation3], 0  ;;  %s1349_s0 = inlined_call_operand.hbm [shape: f32[128,128], index: 0, kind: input, shape index: {}]   ;;  %s1350_s1 = inlined_call_operand.hbm [shape: f32[8,128], index: 1, kind: input, shape index: {}]   ;;  %s1351_s2 = inlined_call_operand.hbm [shape: bf16[128,128], index: 2, kind: input, shape index: {}]   ;;  %s1352_s3 = inlined_call_operand.hbm [shape: bf16[128,128], index: 3, kind: input, shape index: {}]   ;;  %s1353_s4 = inlined_call_operand.hbm [shape: bf16[128,128], index: 4, kind: input, shape index: {}]   ;;  %s1354_s5 = inlined_call_operand.vmem [shape: f32[1,128], index: 5, kind: input, shape index: {}]   ;;  %s1355_s6 = inlined_call_operand.hbm [shape: bf16[128,128], index: 6, kind: input, shape index: {}]   ;;  %s1356_s7 = inlined_call_operand.hbm [shape: bf16[128,128], index: 7, kind: input, shape index: {}]   ;;  %s1357_s8 = inlined_call_operand.vmem [shape: f32[1,128], index: 8, kind: input, shape index: {}]   ;;  %s1358_s9 = inlined_call_operand.hbm [shape: f32[8,128], index: 9, kind: output, shape index: {}]  }
   0x1   :  { %15 = vsyncpa [#allocation6], 0 }
   0x2   :  { %16 = vsyncpa [#allocation9], 0 }
   0x3   :  { %17 = vsyncpa [#allocation12], 0  ;;  %s37_s11 = sshll.u32 %s1350_s1, 4  ;;  %s38_s11 = int_to_ptr.hbm [resolvable:$true] %s37_s11 }
   0x4   :  { %18 = vsyncpa [#allocation4], 0  ;;  %s1185_s12 = smov [#allocation5]   ;;  %s60_s16 = sshll.u32 %s1352_s3, 4  ;;  %s61_s16 = int_to_ptr.hbm [resolvable:$true] %s60_s16 }
   0x5   :  { %s39_s13 = sshll.u32 %s1185_s12, 4  ;;  %s1186_s17 = smov [#allocation8]   ;;  %s40_s13 = int_to_ptr.vmem [resolvable:$true] %s39_s13 }
   0x6   :  { %42 = dma.hbm_to_vmem [thread:$0]  %s38_s11, 128, %s40_s13, [#allocation6]  }
   0x7   :  { %s62_s18 = sshll.u32 %s1186_s17, 4  ;;  %s88_s21 = sshll.u32 %s1355_s6, 4  ;;  %s63_s18 = int_to_ptr.vmem [resolvable:$true] %s62_s18  ;;  %s89_s21 = int_to_ptr.hbm [resolvable:$true] %s88_s21 }
   0x8   :  { %s1187_s1 = smov 64   ;;  %s1188_s22 = smov 4  }
   0x9   :  { %68 = dma.hbm_to_vmem [thread:$0]  %s61_s16, 1024, %s63_s18, [#allocation9], %s1187_s1, %s1187_s1, %s1188_s22  }
   0xa   :  { %s23_s25 = sshll.u32 %s1349_s0, 4  ;;  %s1189_s3 = smov [#allocation11]   ;;  %s24_s25 = int_to_ptr.hbm [resolvable:$true] %s23_s25 }
   0xb   :  { %s90_s26 = sshll.u32 %s1189_s3, 4  ;;  %s1190_s6 = smov [#allocation2]   ;;  %s91_s26 = int_to_ptr.vmem [resolvable:$true] %s90_s26 }
   0xc   :  { %96 = dma.hbm_to_vmem [thread:$0]  %s89_s21, 1024, %s91_s26, [#allocation12], %s1187_s1, %s1187_s1, %s1188_s22  }
   0xd   :  { %s25_s27 = sshll.u32 %s1190_s6, 4  ;;  %s1191_s28 = smov 128   ;;  %s26_s27 = int_to_ptr.vmem [resolvable:$true] %s25_s27 }
   0xe   :  { %s1192_s29 = smov 8   ;;  %s47_s11 = sshll.u32 %s1351_s2, 4  ;;  %s48_s11 = int_to_ptr.hbm [resolvable:$true] %s47_s11 }
   0xf   :  { %31 = dma.hbm_to_vmem [thread:$0]  %s24_s25, 2048, %s26_s27, [#allocation3], %s1191_s28, %s1191_s28, %s1192_s29  }
  0x10   :  { %s1193_s0 = smov [#allocation7]   ;;  %s73_s15 = sshll.u32 %s1353_s4, 4  ;;  %s74_s15 = int_to_ptr.hbm [resolvable:$true] %s73_s15 }
  0x11   :  { %s49_s12 = sshll.u32 %s1193_s0, 4  ;;  %s1194_s16 = smov [#allocation10]   ;;  %s50_s12 = int_to_ptr.vmem [resolvable:$true] %s49_s12 }
  0x12   :  { %55 = dma.hbm_to_vmem [thread:$0]  %s48_s11, 1024, %s50_s12, [#allocation6], %s1187_s1, %s1187_s1, %s1188_s22  }
  0x13   :  { %s75_s17 = sshll.u32 %s1194_s16, 4  ;;  %s101_s20 = sshll.u32 %s1356_s7, 4  ;;  %s76_s17 = int_to_ptr.vmem [resolvable:$true] %s75_s17  ;;  %s102_s20 = int_to_ptr.hbm [resolvable:$true] %s101_s20 }
  0x14   :  { %81 = dma.hbm_to_vmem [thread:$0]  %s74_s15, 1024, %s76_s17, [#allocation9], %s1187_s1, %s1187_s1, %s1188_s22  }
  0x15   :  { %s1195_s2 = smov [#allocation13]  }
  0x16   :  { %s103_s21 = sshll.u32 %s1195_s2, 4  ;;  %s104_s21 = int_to_ptr.vmem [resolvable:$true] %s103_s21 }
  0x17   :  { %109 = dma.hbm_to_vmem [thread:$0]  %s102_s20, 1024, %s104_s21, [#allocation12], %s1187_s1, %s1187_s1, %s1188_s22  }
  0x18   :  { %1175 = dma.done.wait [#allocation3], 2048  }
  0x19   :  { %1176 = vsyncadd [#allocation3], 4294965248 }
  0x1a   :  { %1177 = dma.done.wait [#allocation6], 1152  }
  0x1b   :  { %1178 = vsyncadd [#allocation6], 4294966144 }
  0x1c   :  { %1179 = dma.done.wait [#allocation9], 2048  }
  0x1d   :  { %1180 = vsyncadd [#allocation9], 4294965248 }
  0x1e   :  { %1181 = dma.done.wait [#allocation12], 2048  }
  0x1f   :  { %1182 = vsyncadd [#allocation12], 4294965248  ;;  %v1283_v0 = vld [vmem:[#allocation7 + $0x38] sm:$0xff]  ;;  %v1286_v1 = vld [vmem:[#allocation7 + $0x30] sm:$0xff]  ;;  %s1196_s22 = smov [#allocation14]   ;;  %s752_s25 = sshll.u32 %s1358_s9, 4  ;;  %s753_s25 = int_to_ptr.hbm [resolvable:$true] %s752_s25 }
  0x20   :  { %253 = vmatpush.bf16.msra.mxu0 %v1283_v0  ;;  %v1289_v2 = vld [vmem:[#allocation7 + $0x28] sm:$0xff]  ;;  %v1292_v3 = vld [vmem:[#allocation7 + $0x20] sm:$0xff]  ;;  %v1295_v4 = vld [vmem:[#allocation7 + $0x18] sm:$0xff] }
  0x21   :  { %v1298_v5 = vld [vmem:[#allocation7 + $0x10] sm:$0xff]  ;;  %v1301_v6 = vld [vmem:[#allocation7 + $0x8] sm:$0xff]  ;;  %v925_v7 = vld [vmem:[#allocation7] sm:$0xff] }
  0x22   :  { %v156_v8 = vld [vmem:[#allocation2] sm:$0xff]  ;;  %v157_v9 = vld [vmem:[#allocation2 + $0x8] sm:$0xff]  ;;  %v158_v10 = vld [vmem:[#allocation2 + $0x10] sm:$0xff] }
  0x23   :  { %v159_v11 = vld [vmem:[#allocation2 + $0x18] sm:$0xff]  ;;  %v160_v12 = vld [vmem:[#allocation2 + $0x20] sm:$0xff]  ;;  %v161_v13 = vld [vmem:[#allocation2 + $0x28] sm:$0xff] }
  0x24   :  { %254 = vmatpush.bf16.msra.mxu0 %v1286_v1  ;;  %v162_v14 = vld [vmem:[#allocation2 + $0x30] sm:$0xff]  ;;  %v163_v15 = vld [vmem:[#allocation2 + $0x38] sm:$0xff]  ;;  %v948_v16 = vld [vmem:[#allocation10 + $0x38] sm:$0xff] }
  0x25   :  { %466 = vmatpush.bf16.msra.mxu2 %v948_v16  ;;  %v164_v17 = vld [vmem:[#allocation2 + $0x40] sm:$0xff]  ;;  %v947_v18 = vld [vmem:[#allocation10 + $0x30] sm:$0xff]  ;;  %v946_v19 = vld [vmem:[#allocation10 + $0x28] sm:$0xff] }
  0x26   :  { %v165_v20 = vld [vmem:[#allocation2 + $0x48] sm:$0xff]  ;;  %v940_v21 = vld [vmem:[#allocation8 + $0x38] sm:$0xff]  ;;  %v939_v23 = vld [vmem:[#allocation8 + $0x30] sm:$0xff] }
  0x27   :  { %v945_v22 = vld [vmem:[#allocation10 + $0x20] sm:$0xff]  ;;  %369 = vmatpush.bf16.msra.mxu1 %v940_v21  ;;  %v944_v24 = vld [vmem:[#allocation10 + $0x18] sm:$0xff]  ;;  %v166_v25 = vld [vmem:[#allocation2 + $0x50] sm:$0xff] }
  0x28   :  { %255 = vmatpush.bf16.msra.mxu0 %v1289_v2  ;;  %v938_v26 = vld [vmem:[#allocation8 + $0x28] sm:$0xff]  ;;  %v943_v27 = vld [vmem:[#allocation10 + $0x10] sm:$0xff]  ;;  %v937_v28 = vld [vmem:[#allocation8 + $0x20] sm:$0xff] }
  0x29   :  { %467 = vmatpush.bf16.msra.mxu2 %v947_v18  ;;  %v942_v29 = vld [vmem:[#allocation10 + $0x8] sm:$0xff]  ;;  %v167_v30 = vld [vmem:[#allocation2 + $0x58] sm:$0xff]  ;;  %v936_v31 = vld [vmem:[#allocation8 + $0x18] sm:$0xff] }
  0x2a   :  { %v941_v32 = vld [vmem:[#allocation10] sm:$0xff]  ;;  %v935_v33 = vld [vmem:[#allocation8 + $0x10] sm:$0xff]  ;;  %v168_v34 = vld [vmem:[#allocation2 + $0x60] sm:$0xff] }
  0x2b   :  { %370 = vmatpush.bf16.msra.mxu1 %v939_v23  ;;  %v934_v35 = vld [vmem:[#allocation8 + $0x8] sm:$0xff]  ;;  %v933_v36 = vld [vmem:[#allocation8] sm:$0xff]  ;;  %v171_v39 = vld [vmem:[#allocation2 + $0x78] sm:$0xff] }
  0x2c   :  { %256 = vmatpush.bf16.msra.mxu0 %v1292_v3  ;;  %v169_v37 = vld [vmem:[#allocation2 + $0x68] sm:$0xff]  ;;  %v170_v38 = vld [vmem:[#allocation2 + $0x70] sm:$0xff] }
  0x2d   :  { %468 = vmatpush.bf16.msra.mxu2 %v946_v19 }
  0x2f   :  { %371 = vmatpush.bf16.msra.mxu1 %v938_v26 }
  0x30   :  { %257 = vmatpush.bf16.msra.mxu0 %v1295_v4 }
  0x31   :  { %469 = vmatpush.bf16.msra.mxu2 %v945_v22 }
  0x33   :  { %372 = vmatpush.bf16.msra.mxu1 %v937_v28 }
  0x34   :  { %258 = vmatpush.bf16.msra.mxu0 %v1298_v5 }
  0x35   :  { %470 = vmatpush.bf16.msra.mxu2 %v944_v24 }
  0x37   :  { %373 = vmatpush.bf16.msra.mxu1 %v936_v31 }
  0x38   :  { %259 = vmatpush.bf16.msra.mxu0 %v1301_v6 }
  0x39   :  { %471 = vmatpush.bf16.msra.mxu2 %v943_v27 }
  0x3b   :  { %374 = vmatpush.bf16.msra.mxu1 %v935_v33 }
  0x3c   :  { %260 = vmatpush.bf16.msra.mxu0 %v925_v7 }
  0x3d   :  { %472 = vmatpush.bf16.msra.mxu2 %v942_v29 }
  0x3f   :  { %261 = vmatmul.f32.vlgmr.msra.gmra.mxu0 %v156_v8  ;;  %375 = vmatpush.bf16.msra.mxu1 %v934_v35 }
  0x41   :  { %473 = vmatpush.bf16.msra.mxu2 %v941_v32 }
  0x43   :  { %376 = vmatpush.bf16.msra.mxu1 %v933_v36 }
  0x44   :  { %474 = vmatmul.bf16.vlgmr.msra.gmra.mxu2 %v925_v7 }
  0x47   :  { %264 = vmatmul.f32.gmra.mxu0 %v157_v9 }
  0x4f   :  { %267 = vmatmul.f32.gmra.mxu0 %v158_v10 }
  0x54   :  { %479 = vmatmul.bf16.gmra.mxu2 %v1301_v6 }
  0x57   :  { %270 = vmatmul.f32.gmra.mxu0 %v159_v11 }
  0x5f   :  { %273 = vmatmul.f32.gmra.mxu0 %v160_v12 }
  0x64   :  { %484 = vmatmul.bf16.gmra.mxu2 %v1298_v5 }
  0x67   :  { %276 = vmatmul.f32.gmra.mxu0 %v161_v13 }
  0x6f   :  { %279 = vmatmul.f32.gmra.mxu0 %v162_v14 }
  0x74   :  { %489 = vmatmul.bf16.gmra.mxu2 %v1295_v4  ;;  %v1314_v4 = vld [vmem:[%s1354_s5] ss:$0 sm:$0xff] }
  0x77   :  { %282 = vmatmul.f32.gmra.mxu0 %v163_v15 }
  0x7f   :  { %285 = vmatmul.f32.gmra.mxu0 %v164_v17 }
  0x84   :  { %494 = vmatmul.bf16.gmra.mxu2 %v1292_v3 }
  0x87   :  { %288 = vmatmul.f32.gmra.mxu0 %v165_v20 }
  0x8f   :  { %291 = vmatmul.f32.gmra.mxu0 %v166_v25 }
  0x94   :  { %499 = vmatmul.bf16.gmra.mxu2 %v1289_v2 }
  0x97   :  { %294 = vmatmul.f32.gmra.mxu0 %v167_v30 }
  0x9f   :  { %297 = vmatmul.f32.gmra.mxu0 %v168_v34 }
  0xa4   :  { %504 = vmatmul.bf16.gmra.mxu2 %v1286_v1 }
  0xa7   :  { %300 = vmatmul.f32.gmra.mxu0 %v169_v37 }
  0xaf   :  { %303 = vmatmul.f32.gmra.mxu0 %v170_v38 }
  0xb4   :  { %509 = vmatmul.bf16.gmra.mxu2 %v1283_v0 }
  0xb7   :  { %306 = vmatmul.f32.gmra.mxu0 %v171_v39 }
  0xbc   :  { %v262_v40 = vpop.f32.mrf.mxu0 }
  0xc4   :  { %v265_v41 = vpop.f32.mrf.mxu0 }
  0xc5   :  { %v310_v42 = vpack.c.bf16 %v265_v41, %v262_v40 }
  0xc7   :  { %377 = vmatmul.bf16.vlgmr.msra.gmra.mxu1 %v310_v42  ;;  %v475_v61 = vpop.f32.mrf.mxu2 }
  0xcc   :  { %v268_v43 = vpop.f32.mrf.mxu0 }
  0xcf   :  { %v477_v63 = vpop.f32.mrf.mxu2 }
  0xd4   :  { %v271_v44 = vpop.f32.mrf.mxu0 }
  0xd5   :  { %v311_v45 = vpack.c.bf16 %v271_v44, %v268_v43 }
  0xd7   :  { %382 = vmatmul.bf16.gmra.mxu1 %v311_v45  ;;  %v480_v1 = vpop.f32.mrf.mxu2 }
  0xdc   :  { %v274_v46 = vpop.f32.mrf.mxu0 }
  0xdf   :  { %v482_v6 = vpop.f32.mrf.mxu2 }
  0xe4   :  { %v277_v47 = vpop.f32.mrf.mxu0 }
  0xe5   :  { %v312_v48 = vpack.c.bf16 %v277_v47, %v274_v46 }
  0xe7   :  { %387 = vmatmul.bf16.gmra.mxu1 %v312_v48  ;;  %v485_v11 = vpop.f32.mrf.mxu2 }
  0xec   :  { %v280_v49 = vpop.f32.mrf.mxu0 }
  0xef   :  { %v487_v18 = vpop.f32.mrf.mxu2 }
  0xf4   :  { %v283_v50 = vpop.f32.mrf.mxu0 }
  0xf5   :  { %v313_v51 = vpack.c.bf16 %v283_v50, %v280_v49 }
  0xf7   :  { %392 = vmatmul.bf16.gmra.mxu1 %v313_v51  ;;  %v490_v26 = vpop.f32.mrf.mxu2 }
  0xfc   :  { %v286_v52 = vpop.f32.mrf.mxu0 }
  0xff   :  { %v492_v31 = vpop.f32.mrf.mxu2 }
 0x104   :  { %v289_v53 = vpop.f32.mrf.mxu0 }
 0x105   :  { %v314_v54 = vpack.c.bf16 %v289_v53, %v286_v52 }
 0x107   :  { %397 = vmatmul.bf16.gmra.mxu1 %v314_v54  ;;  %v495_v39 = vpop.f32.mrf.mxu2 }
 0x10c   :  { %v292_v55 = vpop.f32.mrf.mxu0 }
 0x10f   :  { %v497_v45 = vpop.f32.mrf.mxu2 }
 0x114   :  { %v295_v56 = vpop.f32.mrf.mxu0 }
 0x115   :  { %v315_v57 = vpack.c.bf16 %v295_v56, %v292_v55 }
 0x117   :  { %402 = vmatmul.bf16.gmra.mxu1 %v315_v57  ;;  %v500_v51 = vpop.f32.mrf.mxu2 }
 0x11c   :  { %v298_v58 = vpop.f32.mrf.mxu0 }
 0x11f   :  { %v502_v53 = vpop.f32.mrf.mxu2 }
 0x124   :  { %v301_v59 = vpop.f32.mrf.mxu0 }
 0x125   :  { %v316_v60 = vpack.c.bf16 %v301_v59, %v298_v58 }
 0x127   :  { %407 = vmatmul.bf16.gmra.mxu1 %v316_v60  ;;  %v505_v55 = vpop.f32.mrf.mxu2 }
 0x12c   :  { %v304_v62 = vpop.f32.mrf.mxu0 }
 0x12f   :  { %v507_v57 = vpop.f32.mrf.mxu2 }
 0x134   :  { %v307_v2 = vpop.f32.mrf.mxu0 }
 0x135   :  { %v317_v3 = vpack.c.bf16 %v307_v2, %v304_v62 }
 0x137   :  { %412 = vmatmul.bf16.gmra.mxu1 %v317_v3  ;;  %v510_v59 = vpop.f32.mrf.mxu2 }
 0x144   :  { %v378_v0 = vpop.f32.mrf.mxu1 }
 0x145   :  { %v379_v5 = vadd.f32 %v1314_v4, %v378_v0  ;;  %v512_v0 = vpop.f32.mrf.mxu2 }
 0x147   :  { %v515_v7 = vadd.f32 %v475_v61, %v379_v5 }
 0x149   :  { %v1318_v12 = vmax.f32 %v515_v7, 0.0 }
 0x14c   :  { %v380_v8 = vpop.f32.mrf.mxu1 }
 0x14d   :  { %v381_v9 = vadd.f32 %v1314_v4, %v380_v8 }
 0x14f   :  { %v516_v10 = vadd.f32 %v477_v63, %v381_v9 }
 0x151   :  { %v532_v13 = vmax.f32 %v516_v10, 0.0 }
 0x153   :  { %v1321_v14 = vpack.c.bf16 %v532_v13, %v1318_v12 }
 0x154   :  { %v383_v15 = vpop.f32.mrf.mxu1 }
 0x155   :  { %v384_v16 = vadd.f32 %v1314_v4, %v383_v15 }
 0x157   :  { %v517_v17 = vadd.f32 %v480_v1, %v384_v16 }
 0x159   :  { %v533_v22 = vmax.f32 %v517_v17, 0.0 }
 0x15c   :  { %v385_v19 = vpop.f32.mrf.mxu1 }
 0x15d   :  { %v386_v20 = vadd.f32 %v1314_v4, %v385_v19 }
 0x15f   :  { %v518_v21 = vadd.f32 %v482_v6, %v386_v20 }
 0x161   :  { %v534_v23 = vmax.f32 %v518_v21, 0.0 }
 0x163   :  { %v1325_v24 = vpack.c.bf16 %v534_v23, %v533_v22 }
 0x164   :  { %v388_v25 = vpop.f32.mrf.mxu1 }
 0x165   :  { %v389_v27 = vadd.f32 %v1314_v4, %v388_v25 }
 0x167   :  { %v519_v28 = vadd.f32 %v485_v11, %v389_v27 }
 0x169   :  { %v535_v33 = vmax.f32 %v519_v28, 0.0 }
 0x16c   :  { %v390_v29 = vpop.f32.mrf.mxu1 }
 0x16d   :  { %v391_v30 = vadd.f32 %v1314_v4, %v390_v29  ;;  %v556_v29 = vld [vmem:[#allocation5] sm:$0xff] }
 0x16f   :  { %v520_v32 = vadd.f32 %v487_v18, %v391_v30  ;;  %v955_v30 = vld [vmem:[#allocation11 + $0x30] sm:$0xff] }
 0x171   :  { %v536_v34 = vmax.f32 %v520_v32, 0.0  ;;  %v953_v32 = vld [vmem:[#allocation11 + $0x20] sm:$0xff] }
 0x173   :  { %v549_v35 = vpack.c.bf16 %v536_v34, %v535_v33  ;;  %v952_v33 = vld [vmem:[#allocation11 + $0x18] sm:$0xff]  ;;  %v951_v34 = vld [vmem:[#allocation11 + $0x10] sm:$0xff] }
 0x174   :  { %v393_v36 = vpop.f32.mrf.mxu1 }
 0x175   :  { %v394_v37 = vadd.f32 %v1314_v4, %v393_v36  ;;  %v950_v36 = vld [vmem:[#allocation11 + $0x8] sm:$0xff] }
 0x177   :  { %v521_v38 = vadd.f32 %v490_v26, %v394_v37  ;;  %v962_v37 = vld [vmem:[#allocation13 + $0x28] sm:$0xff] }
 0x179   :  { %v537_v43 = vmax.f32 %v521_v38, 0.0  ;;  %v961_v38 = vld [vmem:[#allocation13 + $0x20] sm:$0xff] }
 0x17c   :  { %v395_v40 = vpop.f32.mrf.mxu1 }
 0x17d   :  { %v396_v41 = vadd.f32 %v1314_v4, %v395_v40  ;;  %v959_v40 = vld [vmem:[#allocation13 + $0x10] sm:$0xff] }
 0x17f   :  { %v522_v42 = vadd.f32 %v492_v31, %v396_v41  ;;  %v954_v31 = vld [vmem:[#allocation11 + $0x28] sm:$0xff] }
 0x180   :  { %v958_v41 = vld [vmem:[#allocation13 + $0x8] sm:$0xff] }
 0x181   :  { %v538_v44 = vmax.f32 %v522_v42, 0.0  ;;  %v957_v42 = vld [vmem:[#allocation13] sm:$0xff] }
 0x183   :  { %v550_v46 = vpack.c.bf16 %v538_v44, %v537_v43 }
 0x184   :  { %v398_v47 = vpop.f32.mrf.mxu1 }
 0x185   :  { %v399_v48 = vadd.f32 %v1314_v4, %v398_v47 }
 0x187   :  { %v523_v49 = vadd.f32 %v495_v39, %v399_v48  ;;  %v960_v39 = vld [vmem:[#allocation13 + $0x18] sm:$0xff]  ;;  %v729_v48 = vlaneseq }
 0x189   :  { %v539_v27 = vmax.f32 %v523_v49, 0.0  ;;  %v978_v49 = vld [vmem:[%s1357_s8] ss:$0 sm:$0xff]  ;;  %s750_s8 = sshll.u32 %s1196_s22, 4  ;;  %s751_s8 = int_to_ptr.vmem [resolvable:$true] %s750_s8 }
 0x18c   :  { %v400_v50 = vpop.f32.mrf.mxu1 }
 0x18d   :  { %v401_v13 = vadd.f32 %v1314_v4, %v400_v50  ;;  %v730_v50 = vand.u32 127, %v729_v48 }
 0x18f   :  { %v524_v20 = vadd.f32 %v497_v45, %v401_v13  ;;  %v555_v45 = vpack.c.bf16 %v1318_v12, %v1318_v12  ;;  %vm731_vm0 = vcmp.lt.s32.totalorder %v730_v50, 8 }
 0x191   :  { %v540_v25 = vmax.f32 %v524_v20, 0.0 }
 0x193   :  { %v551_v28 = vpack.c.bf16 %v540_v25, %v539_v27 }
 0x194   :  { %v403_v52 = vpop.f32.mrf.mxu1 }
 0x195   :  { %v404_v8 = vadd.f32 %v1314_v4, %v403_v52 }
 0x197   :  { %v525_v18 = vadd.f32 %v500_v51, %v404_v8 }
 0x199   :  { %v541_v23 = vmax.f32 %v525_v18, 0.0 }
 0x19c   :  { %v405_v54 = vpop.f32.mrf.mxu1 }
 0x19d   :  { %v406_v5 = vadd.f32 %v1314_v4, %v405_v54 }
 0x19f   :  { %v526_v15 = vadd.f32 %v502_v53, %v406_v5 }
 0x1a1   :  { %v542_v21 = vmax.f32 %v526_v15, 0.0 }
 0x1a3   :  { %v552_v26 = vpack.c.bf16 %v542_v21, %v541_v23 }
 0x1a4   :  { %v408_v56 = vpop.f32.mrf.mxu1 }
 0x1a5   :  { %v409_v2 = vadd.f32 %v1314_v4, %v408_v56 }
 0x1a7   :  { %v527_v9 = vadd.f32 %v505_v55, %v409_v2 }
 0x1a9   :  { %v543_v19 = vmax.f32 %v527_v9, 0.0 }
 0x1ac   :  { %v410_v58 = vpop.f32.mrf.mxu1 }
 0x1ad   :  { %v411_v62 = vadd.f32 %v1314_v4, %v410_v58 }
 0x1af   :  { %v528_v6 = vadd.f32 %v507_v57, %v411_v62 }
 0x1b1   :  { %v544_v16 = vmax.f32 %v528_v6, 0.0 }
 0x1b3   :  { %v553_v22 = vpack.c.bf16 %v544_v16, %v543_v19 }
 0x1b4   :  { %v413_v60 = vpop.f32.mrf.mxu1 }
 0x1b5   :  { %v414_v61 = vadd.f32 %v1314_v4, %v413_v60 }
 0x1b7   :  { %v529_v1 = vadd.f32 %v510_v59, %v414_v61 }
 0x1b9   :  { %v545_v10 = vmax.f32 %v529_v1, 0.0 }
 0x1bc   :  { %v415_v63 = vpop.f32.mrf.mxu1 }
 0x1bd   :  { %v416_v3 = vadd.f32 %v1314_v4, %v415_v63  ;;  %v956_v4 = vld [vmem:[#allocation11 + $0x38] sm:$0xff] }
 0x1bf   :  { %v530_v7 = vadd.f32 %v512_v0, %v416_v3 }
 0x1c1   :  { %v546_v11 = vmax.f32 %v530_v7, 0.0 }
 0x1c3   :  { %v554_v17 = vpack.c.bf16 %v546_v11, %v545_v10 }
 0x1c5   :  { %590 = vmatpush.bf16.msra.mxu3 %v554_v17 }
 0x1c9   :  { %591 = vmatpush.bf16.msra.mxu3 %v553_v22 }
 0x1cd   :  { %592 = vmatpush.bf16.msra.mxu3 %v552_v26 }
 0x1d1   :  { %593 = vmatpush.bf16.msra.mxu3 %v551_v28 }
 0x1d5   :  { %594 = vmatpush.bf16.msra.mxu3 %v550_v46 }
 0x1d9   :  { %595 = vmatpush.bf16.msra.mxu3 %v549_v35  ;;  %v949_v35 = vld [vmem:[#allocation11] sm:$0xff] }
 0x1dd   :  { %596 = vmatpush.bf16.msra.mxu3 %v1325_v24  ;;  %v964_v24 = vld [vmem:[#allocation13 + $0x38] sm:$0xff] }
 0x1e1   :  { %597 = vmatpush.bf16.msra.mxu3 %v1321_v14  ;;  %v963_v14 = vld [vmem:[#allocation13 + $0x30] sm:$0xff] }
 0x1e4   :  { %598 = vmatmul.f32.vlgmr.msra.gmra.mxu3 %v556_v29 }
 0x1e5   :  { %654 = vmatpush.bf16.msrb.mxu3 %v956_v4 }
 0x1e9   :  { %655 = vmatpush.bf16.msrb.mxu3 %v955_v30 }
 0x1ed   :  { %656 = vmatpush.bf16.msrb.mxu3 %v954_v31 }
 0x1f1   :  { %657 = vmatpush.bf16.msrb.mxu3 %v953_v32 }
 0x1f5   :  { %658 = vmatpush.bf16.msrb.mxu3 %v952_v33 }
 0x1f9   :  { %659 = vmatpush.bf16.msrb.mxu3 %v951_v34 }
 0x1fd   :  { %660 = vmatpush.bf16.msrb.mxu3 %v950_v36 }
 0x201   :  { %661 = vmatpush.bf16.msrb.mxu3 %v949_v35 }
 0x205   :  { %715 = vmatpush.bf16.msra.mxu3 %v964_v24 }
 0x209   :  { %716 = vmatpush.bf16.msra.mxu3 %v963_v14 }
 0x20d   :  { %717 = vmatpush.bf16.msra.mxu3 %v962_v37 }
 0x211   :  { %718 = vmatpush.bf16.msra.mxu3 %v961_v38 }
 0x215   :  { %719 = vmatpush.bf16.msra.mxu3 %v960_v39 }
 0x219   :  { %720 = vmatpush.bf16.msra.mxu3 %v959_v40 }
 0x21d   :  { %721 = vmatpush.bf16.msra.mxu3 %v958_v41 }
 0x221   :  { %722 = vmatpush.bf16.msra.mxu3 %v957_v42 }
 0x267   :  { %v599_v43 = vpop.f32.mrf.mxu3 }
 0x268   :  { %v602_v44 = vpack.c.bf16 %v599_v43, %v599_v43 }
 0x26a   :  { %662 = vmatmul.bf16.vlgmr.msrb.gmra.mxu3 %v602_v44 }
 0x27a   :  { %723 = vmatmul.bf16.vlgmr.msra.gmra.mxu3 %v555_v45 }
 0x2ed   :  { %v663_v46 = vpop.f32.mrf.mxu3 }
 0x2ee   :  { %v664_v51 = vadd.f32 %v978_v49, %v663_v46 }
 0x2f5   :  { %v665_v47 = vpop.f32.mrf.mxu3 }
 0x2fd   :  { %v724_v52 = vpop.f32.mrf.mxu3 }
 0x2fe   :  { %v728_v53 = vadd.f32 %v724_v52, %v664_v51 }
 0x300   :  { %v732_v54 = vsel %vm731_vm0, %v728_v53, -inf }
 0x301   :  { %733 = vmax.xlane.f32.xlu0 %v732_v54 }
 0x305   :  { %v726_v55 = vpop.f32.mrf.mxu3 }
 0x374   :  { %v734_v56 = vpop.xlane.xlu0 %733 }
 0x375   :  { %v735_v57 = vsub.f32 %v728_v53, %v734_v56 }
 0x377   :  { %v736_v58 = vmul.f32 1.442695, %v735_v57 }
 0x379   :  { %979 = vpow2.f32 %v736_v58 }
 0x37f   :  { %v980_v12 = vpop.eup %979 }
 0x380   :  { %v738_v59 = vsel %vm731_vm0, %v980_v12, 0.0 }
 0x381   :  { %739 = vadd.xlane.f32.xlu0 %v738_v59 }
 0x3f4   :  { %v740_v60 = vpop.xlane.xlu0 %739 }
 0x3f5   :  { %981 = vlog2.f32 %v740_v60 }
 0x3fb   :  { %v982_v61 = vpop.eup %981 }
 0x3fc   :  { %v742_v62 = vmul.f32 0.6931472, %v982_v61 }
 0x3fe   :  { %v743_v63 = vsub.f32 %v735_v57, %v742_v62 }
 0x400   :  { %744 = vst [vmem:[#allocation14] sm:$0xff] %v743_v63 }
 0x401   :  { %755 = dma.vmem_to_hbm [thread:$0]  %s751_s8, 128, %s753_s25, [#allocation4]  }
 0x402   :  { %1183 = dma.done.wait [#allocation4], 128  }
 0x403   :  { %1184 = vsyncadd [#allocation4], 4294967168 }
 0x404   :  { %760 = vsyncpa [#allocation3], 1 }
 0x405   :  { %761 = vsyncpa [#allocation6], 1 }
 0x406   :  { %762 = vsyncpa [#allocation9], 1 }
 0x407   :  { %763 = vsyncpa [#allocation12], 1 }
 0x408   :  { %764 = vsyncpa [#allocation4], 1 }

</bundles_post_ra>
